<compile_context>
chip_gen: v7x
topology: tpu7x:2x2x1
jax: 0.10.0
libtpu: 0.0.40
codegen_flags: <defaults>
</compile_context>

<pallas_src>
import functools
import math

import numpy as np
import jax
import jax.numpy as jnp
from jax.experimental import pallas as pl
from jax.experimental.pallas import tpu as pltpu


# --------------------------------------------------------------------------- #
# Pallas kernel (fused elementwise hot path, one TZ-slab per grid step)
# --------------------------------------------------------------------------- #
def _oct_synth_kernel(num_labels,
                      labels_ref, p_lab_ref, p_noise_ref,
                      t_lab_ref, t_noise_ref,
                      p_decay_ref, t_decay_ref, lut_ref,
                      final_ref, mask_ref):
    labels = labels_ref[...].astype(jnp.int32)          # (TZ,H,W) i8 -> i32 for compares

    # parenchyma_(x): (smooth label map + 1) * gamma noise * slicewise z-decay
    # label maps arrive as small-int i8; unpack/cast to f32 is VPU filler (mem-bound).
    parenchyma = (p_lab_ref[...].astype(jnp.float32)
                  * p_noise_ref[...] * p_decay_ref[...])        # (TZ,1,1) broadcasts
    # parenchyma_(x, shape=10): vessel texture field
    texture = (t_lab_ref[...].astype(jnp.float32)
               * t_noise_ref[...] * t_decay_ref[...])

    # vessels_(x): masked_fill of a per-label intensity, unrolled over labels.
    # num_labels is small here; for hundreds of labels switch to a gathered LUT.
    scaling = jnp.zeros_like(parenchyma)
    for lbl in range(1, num_labels + 1):
        scaling = jnp.where(labels == lbl, lut_ref[lbl], scaling)

    # vessels = scaling * texture ; vessels[vessels == 0] = 1 ; final = parenchyma * vessels
    # texture > 0 everywhere, so vessels == 0 exactly when scaling == 0.
    final_ref[...] = jnp.where(scaling == 0.0, parenchyma,
                               parenchyma * (scaling * texture))
    mask_ref[...] = (labels != 0).astype(jnp.int8)       # bool mask, 1 B/elem writeback


def _pick_tz(Z, H, W,
             target_block_bytes=4 << 20,      # ~4 MiB per f32 input block
             vmem_budget_bytes=24 << 20):     # working set incl. double-buffering
    # bytes per z-slice through VMEM:
    #   labels i8 + 2x label-map i8 + 2x noise f32 + f32 out + i8 mask
    per_z_total = H * W * (1 + 2 * 1 + 2 * 4 + 4 + 1)
    per_z_f32_block = H * W * 4
    cap = min(Z,
              max(1, vmem_budget_bytes // (2 * per_z_total)),   # 2x: pipeline buffers
              max(1, target_block_bytes // per_z_f32_block))
    # keep >= 2 grid steps when Z allows (megacore: shard across both TensorCores)
    if cap >= Z and Z > 1:
        cap = max(1, (Z + 1) // 2)
    # prefer the largest divisor of Z within the cap (no ragged tail block)
    for tz in range(cap, 0, -1):
        if Z % tz == 0:
            return tz
    return 1


def oct_vol_synth_pallas(labels_i8, p_lab_i8, p_noise, p_decay,
                         t_lab_i8, t_noise, t_decay, lut, num_labels):
    Z, H, W = labels_i8.shape
    TZ = _pick_tz(Z, H, W)
    grid = (Z // TZ,)

    vol_spec = pl.BlockSpec((TZ, H, W), lambda z: (z, 0, 0))
    dec_spec = pl.BlockSpec((TZ, 1, 1), lambda z: (z, 0, 0))
    smem_spec = pl.BlockSpec(memory_space=pltpu.MemorySpace.SMEM)
    kernel = functools.partial(_oct_synth_kernel, num_labels)

    final, mask_i8 = pl.pallas_call(
        kernel,
        out_shape=(jax.ShapeDtypeStruct((Z, H, W), jnp.float32),
                   jax.ShapeDtypeStruct((Z, H, W), jnp.int8)),
        grid=grid,
        in_specs=[vol_spec, vol_spec, vol_spec, vol_spec, vol_spec,
                  dec_spec, dec_spec, smem_spec],
        out_specs=[vol_spec, vol_spec],
        compiler_params=pltpu.CompilerParams(
            dimension_semantics=("parallel",),
            vmem_limit_bytes=32 * 1024 * 1024),
    )(labels_i8, p_lab_i8, p_noise, t_lab_i8, t_noise,
      p_decay.reshape(Z, 1, 1), t_decay.reshape(Z, 1, 1), lut)
    return final, mask_i8.astype(jnp.bool_)


# --------------------------------------------------------------------------- #
# Plain-JAX glue: deterministic synthetic parameter / random-field setup.
# --------------------------------------------------------------------------- #
def _smooth_label_map_i8(key, shape3d, nb_classes, ctrl_shape):
    # TODO(synk): approximates cornucopia RandomSmoothLabelMap (cubic-spline control
    # points + JSON config) with trilinear upsampling of low-res noise + argmax.
    low = jax.random.uniform(key, (nb_classes,) + (ctrl_shape,) * 3, dtype=jnp.float32)
    up = jax.image.resize(low, (nb_classes,) + shape3d, method='linear')
    # labels in 1..nb_classes, exact in int8 (kernel casts back to f32)
    return (jnp.argmax(up, axis=0) + 1).astype(jnp.int8)


def _gamma_noise_field(key, shape3d, noise_a, noise_b):
    # RandomGammaNoiseTransform(sigma=Uniform(a, b)): mean-1 gamma multiplicative noise.
    k_sig, k_gam = jax.random.split(key)
    sigma = jax.random.uniform(k_sig, (), minval=noise_a, maxval=noise_b)
    alpha = 1.0 / (sigma ** 2)
    return jax.random.gamma(k_gam, alpha, shape3d, dtype=jnp.float32) * (sigma ** 2)


def _slicewise_field(key, n_slices, thickness):
    # RandomSlicewiseMulFieldTransform(thickness): per-chunk multiplicative field along z.
    n_chunks = math.ceil(n_slices / thickness)
    vals = jax.random.uniform(key, (n_chunks,), minval=0.5, maxval=1.0, dtype=jnp.float32)
    return jnp.repeat(vals, thickness)[:n_slices]


def _vessel_intensity_lut(key, num_labels, n_groups=10, min_i=0.25, max_i=0.75):
    # vessels_(): RandInt(1, n_groups) intensity groups, Uniform(min_i, max_i) each.
    k_n, k_i = jax.random.split(key)
    nb_unique = int(jax.random.randint(k_n, (), 1, n_groups + 1))
    per = int(math.ceil(num_labels / nb_unique))
    intensities = np.asarray(
        jax.random.uniform(k_i, (nb_unique,), minval=min_i, maxval=max_i))
    lut = np.zeros(num_labels + 1, dtype=np.float32)     # lut[0] = 0 (background)
    vessel_labels = list(range(1, num_labels + 1))       # sorted unique labels, sans 0
    for g in range(nb_unique):
        for lbl in vessel_labels[g * per:(g + 1) * per]:
            lut[lbl] = intensities[g]
    return jnp.asarray(lut)


# --------------------------------------------------------------------------- #
if __name__ == "__main__":
    Z, H, W = 8, 16, 128
    NUM_LABELS = 6

    key = jax.random.PRNGKey(0)
    k_lab, k_mask, k_p, k_t, k_lut = jax.random.split(key, 5)

    # Synthetic vessel-label volume: small integer labels, 0 = background.
    raw = jax.random.randint(k_lab, (Z, H, W), 1, NUM_LABELS + 1)
    keep = jax.random.uniform(k_mask, (Z, H, W)) > 0.85
    vessel_labels = jnp.where(keep, raw, 0).astype(jnp.int32)
    labels_i8 = vessel_labels.astype(jnp.int8)            # exact: labels < 128

    # parenchyma_(x): nb_classes=4, shape=5, noise Uniform(0.2, 0.4), z_decay thickness=2
    kp1, kp2, kp3 = jax.random.split(k_p, 3)
    p_lab_i8 = _smooth_label_map_i8(kp1, (Z, H, W), nb_classes=4, ctrl_shape=5)
    p_noise = _gamma_noise_field(kp2, (Z, H, W), 0.2, 0.4)
    p_decay = _slicewise_field(kp3, Z, thickness=2)

    # parenchyma_(x, shape=10): vessel texture field
    kt1, kt2, kt3 = jax.random.split(k_t, 3)
    t_lab_i8 = _smooth_label_map_i8(kt1, (Z, H, W), nb_classes=4, ctrl_shape=10)
    t_noise = _gamma_noise_field(kt2, (Z, H, W), 0.2, 0.4)
    t_decay = _slicewise_field(kt3, Z, thickness=2)

    lut = _vessel_intensity_lut(k_lut, NUM_LABELS)

    final_volume, vessel_mask = oct_vol_synth_pallas(
        labels_i8, p_lab_i8, p_noise, p_decay, t_lab_i8, t_noise, t_decay,
        lut, NUM_LABELS)
    jax.block_until_ready((final_volume, vessel_mask))

    # Plain-JAX reference (identical math) for a correctness check.
    parenchyma_ref = p_lab_i8.astype(jnp.float32) * p_noise * p_decay.reshape(Z, 1, 1)
    texture_ref = t_lab_i8.astype(jnp.float32) * t_noise * t_decay.reshape(Z, 1, 1)
    scaling_ref = lut[vessel_labels]
    vessels_ref = scaling_ref * texture_ref
    vessels_ref = jnp.where(vessels_ref == 0.0, 1.0, vessels_ref)
    final_ref = parenchyma_ref * vessels_ref

    assert final_volume.shape == (Z, H, W) and final_volume.dtype == jnp.float32
    assert vessel_mask.shape == (Z, H, W) and vessel_mask.dtype == jnp.bool_
    assert bool(jnp.all(vessel_mask == (vessel_labels != 0)))
    assert bool(jnp.allclose(final_volume, final_ref, rtol=1e-5, atol=1e-6))
    print("KERNEL_OK")
</pallas_src>

<mosaic_0001>
module attributes {stable_mosaic.version = 11 : i64} {
  func.func @_oct_synth_kernel(%arg0: i32, %arg1: memref<4x16x128xi8, #tpu.memory_space<vmem>>, %arg2: memref<4x16x128xi8, #tpu.memory_space<vmem>>, %arg3: memref<4x16x128xf32, #tpu.memory_space<vmem>>, %arg4: memref<4x16x128xi8, #tpu.memory_space<vmem>>, %arg5: memref<4x16x128xf32, #tpu.memory_space<vmem>>, %arg6: memref<4x1x1xf32, #tpu.memory_space<vmem>>, %arg7: memref<4x1x1xf32, #tpu.memory_space<vmem>>, %arg8: memref<7xf32, #tpu.memory_space<smem>>, %arg9: memref<4x16x128xf32, #tpu.memory_space<vmem>>, %arg10: memref<4x16x128xi8, #tpu.memory_space<vmem>>) attributes {dimension_semantics = [#tpu.dimension_semantics<parallel>], iteration_bounds = array<i64: 2>, scalar_prefetch = 0 : i64, scratch_operands = 0 : i64, tpu.core_type = #tpu.core_type<tc>, window_params = [{transform_indices = @transform_0, window_bounds = array<i64: 4, 16, 128>}, {transform_indices = @transform_1, window_bounds = array<i64: 4, 16, 128>}, {transform_indices = @transform_2, window_bounds = array<i64: 4, 16, 128>}, {transform_indices = @transform_3, window_bounds = array<i64: 4, 16, 128>}, {transform_indices = @transform_4, window_bounds = array<i64: 4, 16, 128>}, {transform_indices = @transform_5, window_bounds = array<i64: 4, 1, 1>}, {transform_indices = @transform_6, window_bounds = array<i64: 4, 1, 1>}, {transform_indices = @transform_7, window_bounds = array<i64: 7>}, {transform_indices = @transform_8, window_bounds = array<i64: 4, 16, 128>}, {transform_indices = @transform_9, window_bounds = array<i64: 4, 16, 128>}]} {
    %c0 = arith.constant 0 : index
    %c0_0 = arith.constant 0 : index
    %c0_1 = arith.constant 0 : index
    %0 = vector.load %arg1[%c0, %c0_0, %c0_1] : memref<4x16x128xi8, #tpu.memory_space<vmem>>, vector<4x16x128xi8>
    %1 = arith.extsi %0 : vector<4x16x128xi8> to vector<4x16x128xi32>
    %c0_2 = arith.constant 0 : index
    %c0_3 = arith.constant 0 : index
    %c0_4 = arith.constant 0 : index
    %2 = vector.load %arg2[%c0_2, %c0_3, %c0_4] : memref<4x16x128xi8, #tpu.memory_space<vmem>>, vector<4x16x128xi8>
    %3 = arith.sitofp %2 : vector<4x16x128xi8> to vector<4x16x128xf32>
    %c0_5 = arith.constant 0 : index
    %c0_6 = arith.constant 0 : index
    %c0_7 = arith.constant 0 : index
    %4 = vector.load %arg3[%c0_5, %c0_6, %c0_7] : memref<4x16x128xf32, #tpu.memory_space<vmem>>, vector<4x16x128xf32>
    %5 = arith.mulf %3, %4 : vector<4x16x128xf32>
    %c0_8 = arith.constant 0 : index
    %c0_9 = arith.constant 0 : index
    %c0_10 = arith.constant 0 : index
    %6 = vector.load %arg6[%c0_8, %c0_9, %c0_10] : memref<4x1x1xf32, #tpu.memory_space<vmem>>, vector<4x1x1xf32>
    %7 = vector.broadcast %6 : vector<4x1x1xf32> to vector<4x16x128xf32>
    %8 = arith.mulf %5, %7 : vector<4x16x128xf32>
    %c0_11 = arith.constant 0 : index
    %c0_12 = arith.constant 0 : index
    %c0_13 = arith.constant 0 : index
    %9 = vector.load %arg4[%c0_11, %c0_12, %c0_13] : memref<4x16x128xi8, #tpu.memory_space<vmem>>, vector<4x16x128xi8>
    %10 = arith.sitofp %9 : vector<4x16x128xi8> to vector<4x16x128xf32>
    %c0_14 = arith.constant 0 : index
    %c0_15 = arith.constant 0 : index
    %c0_16 = arith.constant 0 : index
    %11 = vector.load %arg5[%c0_14, %c0_15, %c0_16] : memref<4x16x128xf32, #tpu.memory_space<vmem>>, vector<4x16x128xf32>
    %12 = arith.mulf %10, %11 : vector<4x16x128xf32>
    %c0_17 = arith.constant 0 : index
    %c0_18 = arith.constant 0 : index
    %c0_19 = arith.constant 0 : index
    %13 = vector.load %arg7[%c0_17, %c0_18, %c0_19] : memref<4x1x1xf32, #tpu.memory_space<vmem>>, vector<4x1x1xf32>
    %14 = vector.broadcast %13 : vector<4x1x1xf32> to vector<4x16x128xf32>
    %15 = arith.mulf %12, %14 : vector<4x16x128xf32>
    %cst = arith.constant 0.000000e+00 : f32
    %16 = vector.broadcast %cst : f32 to vector<4x16x128xf32>
    %c1_i32 = arith.constant 1 : i32
    %17 = vector.broadcast %c1_i32 : i32 to vector<4x16x128xi32>
    %18 = arith.cmpi eq, %1, %17 : vector<4x16x128xi32>
    %c1 = arith.constant 1 : index
    %19 = memref.load %arg8[%c1] : memref<7xf32, #tpu.memory_space<smem>>
    %20 = vector.broadcast %19 : f32 to vector<4x16x128xf32>
    %21 = arith.select %18, %20, %16 : vector<4x16x128xi1>, vector<4x16x128xf32>
    %c2_i32 = arith.constant 2 : i32
    %22 = vector.broadcast %c2_i32 : i32 to vector<4x16x128xi32>
    %23 = arith.cmpi eq, %1, %22 : vector<4x16x128xi32>
    %c2 = arith.constant 2 : index
    %24 = memref.load %arg8[%c2] : memref<7xf32, #tpu.memory_space<smem>>
    %25 = vector.broadcast %24 : f32 to vector<4x16x128xf32>
    %26 = arith.select %23, %25, %21 : vector<4x16x128xi1>, vector<4x16x128xf32>
    %c3_i32 = arith.constant 3 : i32
    %27 = vector.broadcast %c3_i32 : i32 to vector<4x16x128xi32>
    %28 = arith.cmpi eq, %1, %27 : vector<4x16x128xi32>
    %c3 = arith.constant 3 : index
    %29 = memref.load %arg8[%c3] : memref<7xf32, #tpu.memory_space<smem>>
    %30 = vector.broadcast %29 : f32 to vector<4x16x128xf32>
    %31 = arith.select %28, %30, %26 : vector<4x16x128xi1>, vector<4x16x128xf32>
    %c4_i32 = arith.constant 4 : i32
    %32 = vector.broadcast %c4_i32 : i32 to vector<4x16x128xi32>
    %33 = arith.cmpi eq, %1, %32 : vector<4x16x128xi32>
    %c4 = arith.constant 4 : index
    %34 = memref.load %arg8[%c4] : memref<7xf32, #tpu.memory_space<smem>>
    %35 = vector.broadcast %34 : f32 to vector<4x16x128xf32>
    %36 = arith.select %33, %35, %31 : vector<4x16x128xi1>, vector<4x16x128xf32>
    %c5_i32 = arith.constant 5 : i32
    %37 = vector.broadcast %c5_i32 : i32 to vector<4x16x128xi32>
    %38 = arith.cmpi eq, %1, %37 : vector<4x16x128xi32>
    %c5 = arith.constant 5 : index
    %39 = memref.load %arg8[%c5] : memref<7xf32, #tpu.memory_space<smem>>
    %40 = vector.broadcast %39 : f32 to vector<4x16x128xf32>
    %41 = arith.select %38, %40, %36 : vector<4x16x128xi1>, vector<4x16x128xf32>
    %c6_i32 = arith.constant 6 : i32
    %42 = vector.broadcast %c6_i32 : i32 to vector<4x16x128xi32>
    %43 = arith.cmpi eq, %1, %42 : vector<4x16x128xi32>
    %c6 = arith.constant 6 : index
    %44 = memref.load %arg8[%c6] : memref<7xf32, #tpu.memory_space<smem>>
    %45 = vector.broadcast %44 : f32 to vector<4x16x128xf32>
    %46 = arith.select %43, %45, %41 : vector<4x16x128xi1>, vector<4x16x128xf32>
    %cst_20 = arith.constant 0.000000e+00 : f32
    %47 = vector.broadcast %cst_20 : f32 to vector<4x16x128xf32>
    %48 = arith.cmpf oeq, %46, %47 : vector<4x16x128xf32>
    %49 = arith.mulf %46, %15 : vector<4x16x128xf32>
    %50 = arith.mulf %8, %49 : vector<4x16x128xf32>
    %51 = arith.select %48, %8, %50 : vector<4x16x128xi1>, vector<4x16x128xf32>
    %c0_21 = arith.constant 0 : index
    %c0_22 = arith.constant 0 : index
    %c0_23 = arith.constant 0 : index
    %52 = vector.load %arg9[%c0_21, %c0_22, %c0_23] : memref<4x16x128xf32, #tpu.memory_space<vmem>>, vector<4x16x128xf32>
    tpu.vector_store %arg9[%c0_21, %c0_22, %c0_23], %51 {strides = array<i32>} : memref<4x16x128xf32, #tpu.memory_space<vmem>>, vector<4x16x128xf32>,
    %c0_i32 = arith.constant 0 : i32
    %53 = vector.broadcast %c0_i32 : i32 to vector<4x16x128xi32>
    %54 = arith.cmpi ne, %1, %53 : vector<4x16x128xi32>
    %55 = arith.extui %54 : vector<4x16x128xi1> to vector<4x16x128xi8>
    %c0_24 = arith.constant 0 : index
    %c0_25 = arith.constant 0 : index
    %c0_26 = arith.constant 0 : index
    %56 = vector.load %arg10[%c0_24, %c0_25, %c0_26] : memref<4x16x128xi8, #tpu.memory_space<vmem>>, vector<4x16x128xi8>
    tpu.vector_store %arg10[%c0_24, %c0_25, %c0_26], %55 {strides = array<i32>} : memref<4x16x128xi8, #tpu.memory_space<vmem>>, vector<4x16x128xi8>,
    return
  }
  func.func @transform_0(%arg0: i32) -> (i32, i32, i32) {
    %c0_i32 = arith.constant 0 : i32
    %c0_i32_0 = arith.constant 0 : i32
    %c0_i32_1 = arith.constant 0 : i32
    return %arg0, %c0_i32, %c0_i32_0 : i32, i32, i32
  }
  func.func @transform_1(%arg0: i32) -> (i32, i32, i32) {
    %c0_i32 = arith.constant 0 : i32
    %c0_i32_0 = arith.constant 0 : i32
    %c0_i32_1 = arith.constant 0 : i32
    return %arg0, %c0_i32, %c0_i32_0 : i32, i32, i32
  }
  func.func @transform_2(%arg0: i32) -> (i32, i32, i32) {
    %c0_i32 = arith.constant 0 : i32
    %c0_i32_0 = arith.constant 0 : i32
    %c0_i32_1 = arith.constant 0 : i32
    return %arg0, %c0_i32, %c0_i32_0 : i32, i32, i32
  }
  func.func @transform_3(%arg0: i32) -> (i32, i32, i32) {
    %c0_i32 = arith.constant 0 : i32
    %c0_i32_0 = arith.constant 0 : i32
    %c0_i32_1 = arith.constant 0 : i32
    return %arg0, %c0_i32, %c0_i32_0 : i32, i32, i32
  }
  func.func @transform_4(%arg0: i32) -> (i32, i32, i32) {
    %c0_i32 = arith.constant 0 : i32
    %c0_i32_0 = arith.constant 0 : i32
    %c0_i32_1 = arith.constant 0 : i32
    return %arg0, %c0_i32, %c0_i32_0 : i32, i32, i32
  }
  func.func @transform_5(%arg0: i32) -> (i32, i32, i32) {
    %c0_i32 = arith.constant 0 : i32
    %c0_i32_0 = arith.constant 0 : i32
    %c0_i32_1 = arith.constant 0 : i32
    return %arg0, %c0_i32, %c0_i32_0 : i32, i32, i32
  }
  func.func @transform_6(%arg0: i32) -> (i32, i32, i32) {
    %c0_i32 = arith.constant 0 : i32
    %c0_i32_0 = arith.constant 0 : i32
    %c0_i32_1 = arith.constant 0 : i32
    return %arg0, %c0_i32, %c0_i32_0 : i32, i32, i32
  }
  func.func @transform_7(%arg0: i32) -> i32 {
    %c0_i32 = arith.constant 0 : i32
    %c0_i32_0 = arith.constant 0 : i32
    return %c0_i32 : i32
  }
  func.func @transform_8(%arg0: i32) -> (i32, i32, i32) {
    %c0_i32 = arith.constant 0 : i32
    %c0_i32_0 = arith.constant 0 : i32
    %c0_i32_1 = arith.constant 0 : i32
    return %arg0, %c0_i32, %c0_i32_0 : i32, i32, i32
  }
  func.func @transform_9(%arg0: i32) -> (i32, i32, i32) {
    %c0_i32 = arith.constant 0 : i32
    %c0_i32_0 = arith.constant 0 : i32
    %c0_i32_1 = arith.constant 0 : i32
    return %arg0, %c0_i32, %c0_i32_0 : i32, i32, i32
  }
}

</mosaic_0001>

<bundles_post_ra>
// kernel: tpu_custom_call.1
= control target key start
LH: loop header
LB: loop body
LE: loop exit
PB: predicated region body
PF: predicated region fallthrough
CT: control target
= control target key end

     0   :  { %s2477_s0 = inlined_call_operand.hbm [shape: s8[8,16,128], index: 0, kind: input, shape index: {}]   ;;  %s2478_s1 = inlined_call_operand.hbm [shape: s8[8,16,128], index: 1, kind: input, shape index: {}]   ;;  %s2479_s2 = inlined_call_operand.hbm [shape: f32[8,16,128], index: 2, kind: input, shape index: {}]   ;;  %s2480_s3 = inlined_call_operand.hbm [shape: s8[8,16,128], index: 3, kind: input, shape index: {}]   ;;  %s2481_s4 = inlined_call_operand.hbm [shape: f32[8,16,128], index: 4, kind: input, shape index: {}]   ;;  %s2482_s5 = inlined_call_operand.vmem [shape: f32[8,1,1], index: 5, kind: input, shape index: {}]   ;;  %s2483_s6 = inlined_call_operand.vmem [shape: f32[8,1,1], index: 6, kind: input, shape index: {}]   ;;  %s2484_s7 = inlined_call_operand.vmem [shape: f32[7], index: 7, kind: input, shape index: {}]   ;;  %s2485_s8 = inlined_call_operand.hbm [shape: f32[8,16,128], index: 8, kind: output, shape index: {0}]   ;;  %s2486_s9 = inlined_call_operand.hbm [shape: s8[8,16,128], index: 9, kind: output, shape index: {1}]  }
   0x1   :  { %2502 = sst [smem:[#allocation27_spill]] %s2478_s1 }
   0x2   :  { %2503 = sst [smem:[#allocation28_spill]] %s2480_s3 }
   0x3   :  { %2504 = sst [smem:[#allocation29_spill]] %s2484_s7 }
   0x4   :  { %15 = vsyncpa [#allocation3], 0 }
   0x5   :  { %17 = vsyncpa [#allocation3 + $0x1], 0 }
   0x6   :  { %18 = vsyncpa [#allocation7], 0 }
   0x7   :  { %20 = vsyncpa [#allocation7 + $0x1], 0 }
   0x8   :  { %21 = vsyncpa [#allocation10], 0 }
   0x9   :  { %23 = vsyncpa [#allocation10 + $0x1], 0 }
   0xa   :  { %24 = vsyncpa [#allocation5], 0 }
   0xb   :  { %25 = vsyncpa [#allocation4], 0 }
   0xc   :  { %27 = vsyncpa [#allocation4 + $0x1], 0 }
   0xd   :  { %28 = vsyncpa [#allocation15], 0 }
   0xe   :  { %30 = vsyncpa [#allocation15 + $0x1], 0  ;;  %s1799_s30 = smov 0   ;;  %s1801_s10 = smov 0  }
   0xf   :  { %s1803_s11 = smov 0   ;;  %s1805_s12 = smov 0  }
  0x10 LB: > { %2505 = sst [smem:[#allocation22_spill]] %s1718_s30  ;;  %s1820_s13 = sadd.s32 1, %s1730_s12   ;;  %s1730_s12 = sphi %s1805_s12, %s2534_s12   ;;  %s1726_s11 = sphi %s1803_s11, %s2536_s11   ;;  %s1722_s10 = sphi %s1801_s10, %s2538_s10   ;;  %s1718_s30 = sphi %s1799_s30, %s2537_s30  }
  0x11   : > { %2506 = sst [smem:[#allocation23_spill]] %s1726_s11  ;;  %s43_s14 = sadd.s32 1, %s1726_s11 }
  0x12   : > { %2507 = sst [smem:[#allocation24_spill]] %s1820_s13  ;;  %s40_s15 = ssub.s32 %s1730_s12, %s1820_s13 }
  0x13   : > { %p2488_p0 = scmp.ne.s32.totalorder %s1726_s11, %s1722_s10  ;;  %p41_p1 = scmp.eq.s32.totalorder %s40_s15, 0 }
  0x14   : > { %p51_p2 = scmp.eq.s32.totalorder %s1730_s12, 0  ;;  %p1408_p4 = scmp.lt.s32.totalorder %s1730_s12, 2 }
  0x15   : > { %s1831_s16 = scalar_select %p41_p1, %s1726_s11, %s43_s14  }
  0x16   : > { %p52_p5 = por %p51_p2, %p2488_p0  ;;  %s1837_s17 = sand.u32 1, %s1726_s11  }
  0x17   : > { %2508 = sst [smem:[#allocation25_spill]] %s1831_s16  ;;  %s1840_s18 = sshll.u32 %s1837_s17, 4 }
  0x18   : > { %s1843_s19 = sshll.u32 %s1730_s12, 8  ;;  %p1845_p6 = pnand %p1408_p4, %p52_p5 }
  0x19   : > { %s2487_s21 = sand.u32 1, %s1730_s12   ;;  %s2510_s1 = sld [smem:[#allocation27_spill]] }
  0x1a   : > { %s346_s25 = scalar_lea.vmem [#allocation6], %s1840_s18  ;;  %s1861_s27 = scalar_lea.sflag [#allocation7], %s2487_s21 }
  0x1b   : > { %s354_s26 = sshll.u32 %s346_s25, 4  ;;  %p1867_p8 = pneg %p1845_p6  ;;  %s1857_s26 = int_to_ptr.vmem [resolvable:$true] %s354_s26 }
  0x1f   : > { %s1854_s24 = scalar_lea.hbm %s2510_s1, %s1843_s19  ;;  %s1460_s22 = scalar_lea.hbm %s2510_s1, 512 }
  0x20   : > { %s1455_s28 = scalar_lea.hbm %s1854_s24, 256  ;;  %p1461_p11 = scmp.lt.u32.totalorder %s1854_s24, %s2510_s1 }
  0x21   : > { %p1456_p7 = scmp.ne.s32.totalorder %s1854_s24, %s1455_s28  ;;  %p1462_p12 = scmp.lt.u32.totalorder %s1460_s22, %s1455_s28 }
  0x22   : > { %p1464_p1 = scmp.lt.u32.totalorder %s1455_s28, %s1854_s24 }
  0x23   : > { %p1458_p9 = pnand %p1867_p8, %p1456_p7  ;;  %p1463_p13 = por %p1462_p12, %p1461_p11 }
  0x25   : > { %p1459_p10 = pneg %p1458_p9  ;;  %p1465_p2 = por %p1464_p1, %p1463_p13 }
  0x27   : > { %p1466_p4 = pnand %p1465_p2, %p1459_p10 }
  0x29   : > { %1469 = shalt.err (!%p1466_p4)
}
  0x2a   : > { %s1470_s21 = scalar_lea.vmem %s1857_s26, 256  ;;  %s1732_s14 = smov [#allocation6]  }
  0x2b   : > { %p1471_p5 = scmp.ne.s32.totalorder %s1857_s26, %s1470_s21  ;;  %s1475_s15 = sshll.u32 %s1732_s14, 4  ;;  %s1476_s15 = int_to_ptr.vmem [resolvable:$false] %s1475_s15 }
  0x2c   : > { %s1477_s23 = scalar_lea.vmem %s1476_s15, 512  ;;  %p1478_p3 = scmp.lt.s32.totalorder %s1857_s26, %s1476_s15 }
  0x2d   : > { %p1473_p7 = pnand %p1471_p5, %p1867_p8  ;;  %p1479_p0 = scmp.lt.s32.totalorder %s1477_s23, %s1470_s21 }
  0x2f   : > { %p1474_p9 = pneg %p1473_p7  ;;  %p1480_p11 = por %p1479_p0, %p1478_p3 }
  0x31   : > { %p1481_p12 = pnand %p1480_p11, %p1474_p9 }
  0x33   : > { %1484 = shalt.err (!%p1481_p12)
}
  0x34   : > { %s2491_s28 = smov 32   ;;  %s2493_s22 = smov 2  }
  0x35   : > { %1390 = dma.hbm_to_vmem [thread:$0]  (!%p1845_p6), %s1854_s24, 256, %s1857_s26, %s1861_s27, %s2491_s28, %s2491_s28, %s2493_s22  }
  0x36   : > { %s2512_s3 = sld [smem:[#allocation28_spill]]  ;;  %s390_s15 = scalar_lea.vmem [#allocation9], %s1840_s18 }
  0x37   : > { %s398_s23 = sshll.u32 %s390_s15, 4  ;;  %s2513_s1 = sand.u32 1, %s1730_s12   ;;  %s1901_s23 = int_to_ptr.vmem [resolvable:$true] %s398_s23 }
  0x38   : > { %s1905_s16 = scalar_lea.sflag [#allocation10], %s2513_s1 }
  0x3c   : > { %s1898_s14 = scalar_lea.hbm %s2512_s3, %s1843_s19  ;;  %s1490_s25 = scalar_lea.hbm %s2512_s3, 512 }
  0x3d   : > { %s1485_s13 = scalar_lea.hbm %s1898_s14, 256  ;;  %p1491_p13 = scmp.lt.u32.totalorder %s1898_s14, %s2512_s3 }
  0x3e   : > { %p1486_p0 = scmp.ne.s32.totalorder %s1898_s14, %s1485_s13  ;;  %p1492_p1 = scmp.lt.u32.totalorder %s1490_s25, %s1485_s13 }
  0x3f   : > { %p1494_p4 = scmp.lt.u32.totalorder %s1485_s13, %s1898_s14 }
  0x40   : > { %p1488_p3 = pnand %p1486_p0, %p1867_p8  ;;  %p1493_p2 = por %p1492_p1, %p1491_p13 }
  0x42   : > { %p1489_p10 = pneg %p1488_p3  ;;  %p1495_p5 = por %p1494_p4, %p1493_p2 }
  0x44   : > { %p1496_p7 = pnand %p1495_p5, %p1489_p10 }
  0x46   : > { %1499 = shalt.err (!%p1496_p7)
}
  0x47   : > { %s1500_s1 = scalar_lea.vmem %s1901_s23, 256  ;;  %s1735_s15 = smov [#allocation9]  }
  0x48   : > { %p1501_p9 = scmp.ne.s32.totalorder %s1901_s23, %s1500_s1  ;;  %s1505_s24 = sshll.u32 %s1735_s15, 4  ;;  %s1506_s24 = int_to_ptr.vmem [resolvable:$false] %s1505_s24 }
  0x49   : > { %s1507_s28 = scalar_lea.vmem %s1506_s24, 512  ;;  %p1508_p0 = scmp.lt.s32.totalorder %s1901_s23, %s1506_s24 }
  0x4a   : > { %p1503_p11 = pnand %p1501_p9, %p1867_p8  ;;  %p1509_p3 = scmp.lt.s32.totalorder %s1507_s28, %s1500_s1 }
  0x4c   : > { %p1504_p12 = pneg %p1503_p11  ;;  %p1510_p13 = por %p1509_p3, %p1508_p0 }
  0x4e   : > { %p1511_p1 = pnand %p1510_p13, %p1504_p12 }
  0x50   : > { %1514 = shalt.err (!%p1511_p1)
}
  0x51   : > { %s2514_s13 = smov 32   ;;  %s1933_s26 = sadd.s32 4294967295, %s1730_s12  }
  0x52   : > { %1396 = dma.hbm_to_vmem [thread:$0]  (!%p1845_p6), %s1898_s14, 256, %s1901_s23, %s1905_s16, %s2514_s13, %s2514_s13, %s2493_s22  }
  0x53   : > { %s1232_s25 = sadd.s32 4294967294, %s1730_s12   ;;  %p56_p10 = scmp.ne.s32.totalorder %s1722_s10, %s1718_s30 }
  0x54   : > { %p2497_p2 = scmp.eq.s32.totalorder %s1933_s26, 0  ;;  %p257_p4 = scmp.eq.s32.totalorder %s1933_s26, 1 }
  0x55   : > { %p263_p5 = scmp.eq.s32.totalorder %s1232_s25, 1  ;;  %p1233_p7 = scmp.ge.s32.totalorder %s1730_s12, 1 }
  0x56   : > { %p1943_p9 = por %p2497_p2, %p56_p10  ;;  %p2516_p11 = scmp.ne.s32.totalorder %s1726_s11, %s1722_s10 }
  0x57   : > { %p1954_p0 = por %p263_p5, %p56_p10  ;;  %p296_p3 = scmp.lt.s32.totalorder %s1730_s12, 3 }
  0x58   : > { %s2515_s21 = scalar_select %p1943_p9, 1, 0 }
  0x59   : > { %p1950_p12 = por %p257_p4, %p2516_p11  ;;  %s2520_s7 = sld [smem:[#allocation29_spill]] }
  0x5a   : > { %s2518_s23 = scalar_select %p1954_p0, 1, 0 }
  0x5b   : > { %s2517_s14 = scalar_select %p1950_p12, 1, 0 }
  0x5c   : > { %2519 = sst [smem:[#allocation26_spill]] %s2518_s23  ;;  %p1962_p13 = pnand %p1233_p7, %p296_p3 }
  0x5d   : > { %s1974_s3 = scalar_lea.hbm %s2477_s0, %s1843_s19  ;;  %s324_s1 = scalar_lea.vmem [#allocation2], %s1840_s18 }
  0x5e   : > { %s2521_s28 = scalar_select %p1962_p13, 1, 0 }
  0x5f   : > { %s309_s24 = sshll.u32 %s2520_s7, 4  ;;  %p1380_p1 = pneg %p1962_p13  ;;  %s1966_s24 = int_to_ptr.vmem [resolvable:$true] %s309_s24 }
  0x60   : > { %s332_s15 = sshll.u32 %s324_s1, 4  ;;  %s321_s11 = scalar_lea.sflag [#allocation3], %s1837_s17  ;;  %s1983_s15 = int_to_ptr.vmem [resolvable:$true] %s332_s15 }
  0x61   : > { %p1979_p10 = pnand %p1380_p1, %p2497_p2  ;;  %s1515_s23 = scalar_lea.hbm %s1974_s3, 256 }
  0x62   : > { %p1516_p4 = scmp.ne.s32.totalorder %s1974_s3, %s1515_s23  ;;  %s1520_s25 = scalar_lea.hbm %s2477_s0, 512 }
  0x63   : > { %s2522_s7 = scalar_select %p1979_p10, 1, 0 }
  0x64   : > { %p1518_p5 = pnand %p1516_p4, %p1867_p8  ;;  %p1521_p11 = scmp.lt.u32.totalorder %s1974_s3, %s2477_s0 }
  0x65   : > { %p1522_p3 = scmp.lt.u32.totalorder %s1520_s25, %s1515_s23  ;;  %p1524_p2 = scmp.lt.u32.totalorder %s1515_s23, %s1974_s3 }
  0x66   : > { %p1519_p7 = pneg %p1518_p5 }
  0x67   : > { %p1523_p1 = por %p1522_p3, %p1521_p11 }
  0x69   : > { %p1525_p0 = por %p1524_p2, %p1523_p1 }
  0x6b   : > { %p1526_p12 = pnand %p1525_p0, %p1519_p7 }
  0x6d   : > { %1529 = shalt.err (!%p1526_p12)
}
  0x6e   : > { %s1530_s1 = scalar_lea.vmem %s1983_s15, 256  ;;  %s1736_s19 = smov [#allocation2]  }
  0x6f   : > { %p1531_p4 = scmp.ne.s32.totalorder %s1983_s15, %s1530_s1  ;;  %s1535_s22 = sshll.u32 %s1736_s19, 4  ;;  %s1536_s22 = int_to_ptr.vmem [resolvable:$false] %s1535_s22 }
  0x70   : > { %s1537_s30 = scalar_lea.vmem %s1536_s22, 512  ;;  %p1538_p13 = scmp.lt.s32.totalorder %s1983_s15, %s1536_s22 }
  0x71   : > { %p1533_p5 = pnand %p1531_p4, %p1867_p8  ;;  %p1539_p10 = scmp.lt.s32.totalorder %s1537_s30, %s1530_s1 }
  0x73   : > { %p1534_p9 = pneg %p1533_p5  ;;  %p1540_p11 = por %p1539_p10, %p1538_p13 }
  0x75   : > { %p1541_p3 = pnand %p1540_p11, %p1534_p9 }
  0x77   : > { %1544 = shalt.err (!%p1541_p3)
}
  0x78   : > { %s2523_s23 = smov 2   ;;  %s1244_s25 = sshll.u32 %s1837_s17, 6 }
  0x79   : > { %1387 = dma.hbm_to_vmem [thread:$0]  (!%p1845_p6), %s1974_s3, 256, %s1983_s15, %s321_s11, %s2514_s13, %s2514_s13, %s2523_s23  }
  0x7a   : > { %s1545_s18 = scalar_lea.vmem %s1966_s24, 16  ;;  %p2524_p9 = scmp.ne.s32.totalorder %s2522_s7, 0 }
  0x7b   : > { %p1546_p2 = scmp.ne.s32.totalorder %s1966_s24, %s1545_s18  ;;  %p1553_p10 = scmp.lt.s32.totalorder %s1966_s24, %s1966_s24 }
  0x7c   : > { %p1547_p12 = pneg %p2524_p9  ;;  %p1554_p7 = scmp.lt.s32.totalorder %s1545_s18, %s1545_s18 }
  0x7e   : > { %p1548_p0 = pnand %p1547_p12, %p1546_p2  ;;  %p1555_p1 = por %p1554_p7, %p1553_p10 }
  0x80   : > { %p1549_p13 = pneg %p1548_p0 }
  0x82   : > { %p1556_p4 = pnand %p1555_p1, %p1549_p13 }
  0x84   : > { %1559 = shalt.err (!%p1556_p4)
}
  0x85   : > { %s1737_s1 = smov [#allocation12]   ;;  %s1296_s3 = sshll.u32 %s1730_s12, 10 }
  0x86   : > { %1383 = dma.vmem_to_smem (!%p2524_p9), %s1966_s24, 16, %s1737_s1, [#allocation5]  }
  0x87   : > { %s2028_s15 = scalar_lea.hbm %s2479_s2, %s1296_s3  ;;  %s368_s19 = scalar_lea.vmem [#allocation8], %s1244_s25 }
  0x88   : > { %s376_s7 = sshll.u32 %s368_s19, 4  ;;  %s1560_s22 = scalar_lea.hbm %s2028_s15, 1024  ;;  %s2032_s7 = int_to_ptr.vmem [resolvable:$true] %s376_s7 }
  0x89   : > { %p1561_p5 = scmp.ne.s32.totalorder %s2028_s15, %s1560_s22  ;;  %s1565_s23 = scalar_lea.hbm %s2479_s2, 2048 }
  0x8a   : > { %p1566_p2 = scmp.lt.u32.totalorder %s2028_s15, %s2479_s2  ;;  %p1567_p9 = scmp.lt.u32.totalorder %s1565_s23, %s1560_s22 }
  0x8b   : > { %p1563_p11 = pnand %p1561_p5, %p1867_p8  ;;  %p1569_p0 = scmp.lt.u32.totalorder %s1560_s22, %s2028_s15 }
  0x8c   : > { %p1568_p12 = por %p1567_p9, %p1566_p2 }
  0x8d   : > { %p1564_p3 = pneg %p1563_p11 }
  0x8e   : > { %p1570_p13 = por %p1569_p0, %p1568_p12 }
  0x90   : > { %p1571_p10 = pnand %p1570_p13, %p1564_p3 }
  0x92   : > { %1574 = shalt.err (!%p1571_p10)
}
  0x93   : > { %s1575_s11 = scalar_lea.vmem %s2032_s7, 1024  ;;  %s1738_s13 = smov [#allocation8]  }
  0x94   : > { %p1576_p7 = scmp.ne.s32.totalorder %s2032_s7, %s1575_s11  ;;  %s1580_s19 = sshll.u32 %s1738_s13, 4  ;;  %s1581_s19 = int_to_ptr.vmem [resolvable:$false] %s1580_s19 }
  0x95   : > { %s1582_s24 = scalar_lea.vmem %s1581_s19, 2048  ;;  %p1583_p5 = scmp.lt.s32.totalorder %s2032_s7, %s1581_s19 }
  0x96   : > { %p1578_p1 = pnand %p1576_p7, %p1867_p8  ;;  %p1584_p11 = scmp.lt.s32.totalorder %s1582_s24, %s1575_s11 }
  0x98   : > { %p1579_p4 = pneg %p1578_p1  ;;  %p1585_p2 = por %p1584_p11, %p1583_p5 }
  0x9a   : > { %p1586_p9 = pnand %p1585_p2, %p1579_p4 }
  0x9c   : > { %1589 = shalt.err (!%p1586_p9)
}
  0x9d   : > { %s1739_s22 = smov 128   ;;  %s1740_s30 = smov 8  }
  0x9e   : > { %1393 = dma.hbm_to_vmem [thread:$0]  (!%p1845_p6), %s2028_s15, 1024, %s2032_s7, %s1861_s27, %s1739_s22, %s1739_s22, %s1740_s30  }
  0x9f   : > { %s2064_s1 = scalar_lea.hbm %s2481_s4, %s1296_s3  ;;  %s412_s11 = scalar_lea.vmem [#allocation11], %s1244_s25 }
  0xa0   : > { %s420_s13 = sshll.u32 %s412_s11, 4  ;;  %s1590_s19 = scalar_lea.hbm %s2064_s1, 1024  ;;  %s2068_s13 = int_to_ptr.vmem [resolvable:$true] %s420_s13 }
  0xa1   : > { %p1591_p3 = scmp.ne.s32.totalorder %s2064_s1, %s1590_s19  ;;  %s1595_s7 = scalar_lea.hbm %s2481_s4, 2048 }
  0xa2   : > { %p1596_p13 = scmp.lt.u32.totalorder %s2064_s1, %s2481_s4  ;;  %p1597_p10 = scmp.lt.u32.totalorder %s1595_s7, %s1590_s19 }
  0xa3   : > { %p1593_p12 = pnand %p1591_p3, %p1867_p8  ;;  %p1599_p1 = scmp.lt.u32.totalorder %s1590_s19, %s2064_s1 }
  0xa4   : > { %p1598_p7 = por %p1597_p10, %p1596_p13 }
  0xa5   : > { %p1594_p0 = pneg %p1593_p12 }
  0xa6   : > { %p1600_p4 = por %p1599_p1, %p1598_p7 }
  0xa8   : > { %p1601_p5 = pnand %p1600_p4, %p1594_p0 }
  0xaa   : > { %1604 = shalt.err (!%p1601_p5)
}
  0xab   : > { %s1605_s17 = scalar_lea.vmem %s2068_s13, 1024  ;;  %s1741_s25 = smov [#allocation11]  }
  0xac   : > { %p1606_p11 = scmp.ne.s32.totalorder %s2068_s13, %s1605_s17  ;;  %s1610_s23 = sshll.u32 %s1741_s25, 4  ;;  %s1611_s23 = int_to_ptr.vmem [resolvable:$false] %s1610_s23 }
  0xad   : > { %s1612_s18 = scalar_lea.vmem %s1611_s23, 2048  ;;  %p1613_p3 = scmp.lt.s32.totalorder %s2068_s13, %s1611_s23 }
  0xae   : > { %p1608_p2 = pnand %p1606_p11, %p1867_p8  ;;  %p1614_p12 = scmp.lt.s32.totalorder %s1612_s18, %s1605_s17 }
  0xb0   : > { %p1609_p9 = pneg %p1608_p2  ;;  %p1615_p13 = por %p1614_p12, %p1613_p3 }
  0xb2   : > { %p1616_p10 = pnand %p1615_p13, %p1609_p9 }
  0xb4   : > { %1619 = shalt.err (!%p1616_p10)
}
  0xb5   : > { %1399 = dma.hbm_to_vmem [thread:$0]  (!%p1845_p6), %s2064_s1, 1024, %s2068_s13, %s1905_s16, %s1739_s22, %s1739_s22, %s1740_s30  }
  0xb6   : > { %p2525_p8 = scmp.ne.s32.totalorder %s2521_s28, 0 }
  0xb7   : > { %s2098_s29 = sand.u32 (!%p2525_p8), 1, %s1722_s10   ;;  %p2526_p0 = scmp.ne.s32.totalorder (!%p2525_p8), %s2515_s21, 0 }
  0xb8   : > { %448 = sbr.rel (%p2525_p8) target bundleno = 372 (0x174), region = 52  ;;  %s2101_s11 = sshll.u32 (!%p2525_p8), %s2098_s29, 4 }
  0xb9   : > { %s451_s20 = scalar_lea.sflag (!%p2525_p8), [#allocation3], %s2098_s29  ;;  %s454_s19 = scalar_lea.vmem (!%p2525_p8), [#allocation2], %s2101_s11 }
  0xbf   : > { %1693 = dma.done.wait (%p2526_p0), %s451_s20, 256  }
  0xc0   : > { %1695 = vsyncadd (%p2526_p0), %s451_s20, 4294967040  ;;  %s459_s16 = sand.u32 1, %s1933_s26   ;;  %s463_s22 = scalar_lea.vmem [#allocation6], %s2101_s11 }
  0xc1   : > { %s460_s28 = scalar_lea.sflag [#allocation7], %s459_s16 }
  0xc2   : > { %1697 = dma.done.wait (%p2526_p0), %s460_s28, 1280  }
  0xc3   : > { %1699 = vsyncadd (%p2526_p0), %s460_s28, 4294966016  ;;  %s2116_s30 = sshll.u32 %s2098_s29, 6  ;;  %s478_s13 = scalar_lea.sflag [#allocation10], %s459_s16 }
  0xc4   : > { %s2119_s1 = scalar_lea.vmem [#allocation8], %s2116_s30  ;;  %s481_s27 = scalar_lea.vmem [#allocation9], %s2101_s11 }
  0xc5   : > { %1701 = dma.done.wait (%p2526_p0), %s478_s13, 1280  }
  0xc6   : > { %1703 = vsyncadd (%p2526_p0), %s478_s13, 4294966016  ;;  %s2127_s15 = scalar_lea.vmem [#allocation11], %s2116_s30  ;;  %p2527_p6 = scmp.eq.s32.totalorder %s1933_s26, 0 }
  0xc8   : > { %1705 = dma.done.wait (%p2527_p6), [#allocation5], 16   ;;  %p2528_p7 = pmov %p2527_p6 }
  0xca   : > { %1707 = vsyncadd (%p2528_p7), [#allocation5], 4294967280 }
  0xcb   : > { %499 = sfence }
  0xcc   : > { %v1306_v0 = vld [vmem:[%s454_s19] sm:$0xff]   ;;  %v1354_v1 = vld [vmem:[%s454_s19 + $0x8] sm:$0xff]   ;;  %s1265_s7 = sshll.u32 %s1933_s26, 2  ;;  %v1742_v2 = vmov 0   ;;  %s562_s18 = scalar_lea.vmem [#allocation14], %s2101_s11 }
  0xcd   : > { %1454 = vset.pattern.permute.xlu1 %v1742_v2  ;;  %v2134_v3 = vunpack.c.0.s8 %v1306_v0  ;;  %v2136_v4 = vunpack.c.1.s8 %v1306_v0  ;;  %v2138_v5 = vunpack.c.2.s8 %v1306_v0  ;;  %v2140_v6 = vunpack.c.3.s8 %v1306_v0  ;;  %1453 = vset.pattern.permute.xlu0 %v1742_v2  ;;  %p569_p1 = scmp.lt.s32.totalorder %s1265_s7, 7  ;;  %s1304_s20 = sshll.u32 %s1933_s26, 8 }
  0xce   : > { %v2142_v7 = vunpack.c.0.s8 %v1354_v1  ;;  %v2144_v8 = vunpack.c.1.s8 %v1354_v1  ;;  %v2150_v9 = vunpack.c.2.s8 %v1354_v1  ;;  %v2152_v10 = vunpack.c.3.s8 %v1354_v1  ;;  %s1011_s19 = sshll.u32 %s562_s18, 4  ;;  %s2181_s13 = scalar_lea.hbm %s2486_s9, %s1304_s20  ;;  %s2183_s19 = int_to_ptr.vmem [resolvable:$true] %s1011_s19 }
  0xcf   : > { %vm922_vm0 = vcmp.ne.s32.totalorder %v2134_v3, 0  ;;  %vm923_vm1 = vcmp.ne.s32.totalorder %v2136_v4, 0  ;;  %vm924_vm2 = vcmp.ne.s32.totalorder %v2138_v5, 0  ;;  %vm925_vm3 = vcmp.ne.s32.totalorder %v2140_v6, 0  ;;  %s2540_s7 = smov (!%p569_p1, %s1265_s7), 7  ;;  %s1620_s21 = scalar_lea.vmem %s2183_s19, 256 }
  0xd0   : > { %vm930_vm4 = vmpackc.low %vm923_vm1, %vm922_vm0  ;;  %vm926_vm5 = vcmp.ne.s32.totalorder %v2142_v7, 0  ;;  %vm927_vm6 = vcmp.ne.s32.totalorder %v2144_v8, 0  ;;  %s576_s24 = scalar_lea.vmem %s2483_s6, %s2540_s7  ;;  %vm928_vm9 = vcmp.ne.s32.totalorder %v2150_v9, 0  ;;  %vm929_vm10 = vcmp.ne.s32.totalorder %v2152_v10, 0  ;;  %s2166_s23 = scalar_lea.vmem %s2482_s5, %s2540_s7 }
  0xd1   : > { %vm931_vm7 = vmpackc.even %vm930_vm4, %vm930_vm4  ;;  %v1273_v12 = vld [vmem:[%s576_s24 + $0x2] ss:$0 sm:$0xff]  ;;  %v1271_v13 = vld [vmem:[%s576_s24] ss:$0 sm:$0xff]  ;;  %s980_s7 = scalar_lea.sflag [#allocation15], %s2098_s29  ;;  %p1621_p4 = scmp.ne.s32.totalorder %s2183_s19, %s1620_s21 }
  0xd2   : > { %vm932_vm8 = vmpackc.low %vm925_vm3, %vm924_vm2  ;;  %v938_v11 = vsel %vm931_vm7, 16843009, %v1742_v2  ;;  %759 = vperm.xlu1 %1454, %v1273_v12   ;;  %751 = vperm.xlu0 %1453, %v1271_v13   ;;  %v1274_v17 = vld [vmem:[%s576_s24 + $0x3] ss:$0 sm:$0xff]  ;;  %v1272_v18 = vld [vmem:[%s576_s24 + $0x1] ss:$0 sm:$0xff] }
  0xd3   : > { %vm933_vm11 = vmpackc.even %vm932_vm8, %vm932_vm8  ;;  %v942_v14 = vunpack.c.0.s8 %v938_v11  ;;  %v943_v15 = vunpack.c.1.s8 %v938_v11  ;;  %v1268_v31 = vld [vmem:[%s2166_s23 + $0x1] ss:$0 sm:$0xff]  ;;  %v1267_v36 = vld [vmem:[%s2166_s23] ss:$0 sm:$0xff]  ;;  %p2529_p5 = scmp.ne.s32.totalorder %s2517_s14, 0  ;;  %s1743_s3 = smov [#allocation14]  }
  0xd4   : > { %vm934_vm12 = vmpackc.low %vm927_vm6, %vm926_vm5  ;;  %v939_v16 = vsel %vm933_vm11, 16843009, %v1742_v2  ;;  %v1270_v43 = vld [vmem:[%s2166_s23 + $0x3] ss:$0 sm:$0xff]  ;;  %v1269_v46 = vld [vmem:[%s2166_s23 + $0x2] ss:$0 sm:$0xff] }
  0xd5   : > { %vm935_vm13 = vmpackc.even %vm934_vm12, %vm934_vm12  ;;  %v944_v19 = vunpack.c.0.s8 %v939_v16  ;;  %v945_v20 = vunpack.c.1.s8 %v939_v16  ;;  %v950_v21 = vpack.c.b16 %v942_v14, %v942_v14  ;;  %v952_v22 = vpack.c.b16 %v943_v15, %v943_v15  ;;  %p1622_p11 = pnand %p1621_p4, %p2529_p5  ;;  %s1624_s24 = sshll.u32 %s1743_s3, 4  ;;  %s1625_s24 = int_to_ptr.vmem [resolvable:$false] %s1624_s24 }
  0xd6   : > { %vm936_vm14 = vmpackc.low %vm929_vm10, %vm928_vm9  ;;  %v940_v23 = vsel %vm935_vm13, 16843009, %v1742_v2  ;;  %763 = vperm.xlu1 %1454, %v1274_v17   ;;  %755 = vperm.xlu0 %1453, %v1272_v18   ;;  %s1626_s17 = scalar_lea.vmem %s1625_s24, 512  ;;  %p1627_p9 = scmp.lt.s32.totalorder %s2183_s19, %s1625_s24 }
  0xd7   : > { %vm937_vm15 = vmpackc.even %vm936_vm14, %vm936_vm14  ;;  %v946_v24 = vunpack.c.0.s8 %v940_v23  ;;  %v947_v25 = vunpack.c.1.s8 %v940_v23  ;;  %v951_v26 = vpack.c.b8 %v950_v21, %v950_v21  ;;  %v953_v27 = vpack.c.b8 %v952_v22, %v952_v22  ;;  %p1623_p2 = pneg %p1622_p11  ;;  %p1628_p3 = scmp.lt.s32.totalorder %s1626_s17, %s1620_s21 }
  0xd8   : > { %v941_v28 = vsel %vm937_vm15, 16843009, %v1742_v2  ;;  %v954_v29 = vpack.c.b16 %v944_v19, %v944_v19  ;;  %v956_v30 = vpack.c.b16 %v945_v20, %v945_v20 }
  0xd9   : > { %v948_v32 = vunpack.c.0.s8 %v941_v28  ;;  %v949_v33 = vunpack.c.1.s8 %v941_v28  ;;  %v958_v34 = vpack.c.b16 %v946_v24, %v946_v24  ;;  %v960_v35 = vpack.c.b16 %v947_v25, %v947_v25  ;;  %966 = vst [vmem:[%s562_s18] sm:$0x3] %v951_v26  ;;  %967 = vst [vmem:[%s562_s18 + $0x2] sm:$0x3] %v953_v27  ;;  %p1629_p12 = por %p1628_p3, %p1627_p9 }
  0xda   : > { %v955_v37 = vpack.c.b8 %v954_v29, %v954_v29  ;;  %v957_v38 = vpack.c.b8 %v956_v30, %v956_v30  ;;  %667 = vperm.xlu1 %1454, %v1268_v31   ;;  %663 = vperm.xlu0 %1453, %v1267_v36  }
  0xdb   : > { %v959_v39 = vpack.c.b8 %v958_v34, %v958_v34  ;;  %v961_v40 = vpack.c.b8 %v960_v35, %v960_v35  ;;  %v962_v41 = vpack.c.b16 %v948_v32, %v948_v32  ;;  %v964_v42 = vpack.c.b16 %v949_v33, %v949_v33  ;;  %p1630_p13 = pnand %p1629_p12, %p1623_p2 }
  0xdc   : > { %968 = vst [vmem:[%s562_s18 + $0x4] sm:$0x3] %v955_v37  ;;  %969 = vst [vmem:[%s562_s18 + $0x6] sm:$0x3] %v957_v38 }
  0xdd   : > { %v963_v44 = vpack.c.b8 %v962_v41, %v962_v41  ;;  %v965_v45 = vpack.c.b8 %v964_v42, %v964_v42  ;;  %970 = vst [vmem:[%s562_s18 + $0x8] sm:$0x3] %v959_v39  ;;  %971 = vst [vmem:[%s562_s18 + $0xa] sm:$0x3] %v961_v40 }
  0xde   : > { %675 = vperm.xlu1 %1454, %v1270_v43   ;;  %671 = vperm.xlu0 %1453, %v1269_v46  }
  0xdf   : > { %972 = vst [vmem:[%s562_s18 + $0xc] sm:$0x3] %v963_v44  ;;  %973 = vst [vmem:[%s562_s18 + $0xe] sm:$0x3] %v965_v45 }
  0xe0   : > { %1633 = shalt.err (!%p1630_p13)
}
  0xe1   : > { %s1634_s25 = scalar_lea.hbm %s2181_s13, 256  ;;  %s1638_s20 = scalar_lea.hbm %s2486_s9, 512 }
  0xe2   : > { %p1635_p10 = scmp.ne.s32.totalorder %s2181_s13, %s1634_s25  ;;  %p1639_p6 = scmp.lt.u32.totalorder %s2181_s13, %s2486_s9 }
  0xe3   : > { %p1640_p7 = scmp.lt.u32.totalorder %s1638_s20, %s1634_s25  ;;  %p1642_p4 = scmp.lt.u32.totalorder %s1634_s25, %s2181_s13 }
  0xe4   : > { %p1636_p8 = pnand %p1635_p10, %p2529_p5 }
  0xe5   : > { %p1641_p1 = por %p1640_p7, %p1639_p6 }
  0xe6   : > { %p1637_p0 = pneg %p1636_p8 }
  0xe7   : > { %p1643_p11 = por %p1642_p4, %p1641_p1 }
  0xe9   : > { %p1644_p2 = pnand %p1643_p11, %p1637_p0 }
  0xeb   : > { %1647 = shalt.err (!%p1644_p2)
}
  0xec   : > { %s1744_s21 = smov 32   ;;  %s1745_s3 = smov 2   ;;  %vm778_vm0 = vcmp.eq.s32.totalorder %v2142_v7, 1  ;;  %vm779_vm1 = vcmp.eq.s32.totalorder %v2144_v8, 1  ;;  %vm796_vm2 = vcmp.eq.s32.totalorder %v2142_v7, 2  ;;  %v2219_v50 = vld [vmem:[%s481_s27 + $0x8] sm:$0xff]  }
  0xed   : > { %1377 = dma.vmem_to_hbm [thread:$0]  (%p2529_p5), %s2183_s19, 256, %s2181_s13, %s980_s7, %s1744_s21, %s1744_s21, %s1745_s3   ;;  %vm797_vm3 = vcmp.eq.s32.totalorder %v2144_v8, 2  ;;  %vm814_vm4 = vcmp.eq.s32.totalorder %v2142_v7, 3  ;;  %v1347_v54 = vunpack.c.0.s8 %v2219_v50  ;;  %vm815_vm5 = vcmp.eq.s32.totalorder %v2144_v8, 3 }
  0xee   : > { %s1275_s24 = sld [smem:[#allocation12 + $0x1]]  ;;  %s1276_s17 = sld [smem:[#allocation12 + $0x2]]  ;;  %v2234_v56 = vld [vmem:[%s481_s27] sm:$0xff]   ;;  %v1348_v57 = vunpack.c.1.s8 %v2219_v50  ;;  %vm774_vm6 = vcmp.eq.s32.totalorder %v2134_v3, 1  ;;  %vm832_vm7 = vcmp.eq.s32.totalorder %v2142_v7, 4  ;;  %vm775_vm8 = vcmp.eq.s32.totalorder %v2136_v4, 1 }
  0xef   : > { %s1277_s23 = sld [smem:[#allocation12 + $0x3]]  ;;  %s1278_s25 = sld [smem:[#allocation12 + $0x4]]  ;;  %vm833_vm9 = vcmp.eq.s32.totalorder %v2144_v8, 4  ;;  %v1339_v61 = vunpack.c.0.s8 %v2234_v56  ;;  %v1340_v62 = vunpack.c.1.s8 %v2234_v56  ;;  %v706_v63 = vcvt.s32.f32 %v1347_v54  ;;  %v714_v15 = vld [vmem:[%s2127_s15 + $0x20] sm:$0xff]  ;;  %v715_v16 = vld [vmem:[%s2127_s15 + $0x28] sm:$0xff] }
  0xf0   : > { %s1279_s19 = sld [smem:[#allocation12 + $0x5]]  ;;  %s2230_s13 = sld [smem:[#allocation12 + $0x6]]  ;;  %vm792_vm10 = vcmp.eq.s32.totalorder %v2134_v3, 2  ;;  %v1351_v1 = vunpack.c.2.s8 %v2219_v50  ;;  %v707_v2 = vcvt.s32.f32 %v1348_v57  ;;  %vm793_vm11 = vcmp.eq.s32.totalorder %v2136_v4, 2  ;;  %v710_v20 = vld [vmem:[%s2127_s15] sm:$0xff]  ;;  %v711_v27 = vld [vmem:[%s2127_s15 + $0x8] sm:$0xff] }
  0xf1   : > { %vm850_vm12 = vcmp.eq.s32.totalorder %v2142_v7, 5  ;;  %vm851_vm13 = vcmp.eq.s32.totalorder %v2144_v8, 5  ;;  %vm868_vm14 = vcmp.eq.s32.totalorder %v2142_v7, 6  ;;  %v702_v17 = vcvt.s32.f32 %v1339_v61  ;;  %s1302_s11 = sshll.u32 %s1933_s26, 10  ;;  %s1746_s18 = smov [#allocation13]  }
  0xf2   : > { %vm810_vm15 = vcmp.eq.s32.totalorder %v2134_v3, 3  ;;  %v703_v24 = vcvt.s32.f32 %v1340_v62  ;;  %v2273_v25 = vmul.f32 %v714_v15, %v706_v63  ;;  %v2275_v26 = vmul.f32 %v715_v16, %v707_v2  ;;  %v1322_v63 = vld [vmem:[%s463_s22] ss:$12 sps:$4 sm:$0xff]   ;;  %s2427_s27 = scalar_lea.hbm %s2485_s8, %s1302_s11  ;;  %s1652_s20 = sshll.u32 %s1746_s18, 4  ;;  %s1653_s20 = int_to_ptr.vmem [resolvable:$false] %s1652_s20 }
  0xf3   : > { %v2280_v29 = vmul.f32 %v710_v20, %v702_v17  ;;  %v708_v44 = vcvt.s32.f32 %v1351_v1  ;;  %v1343_v54 = vunpack.c.2.s8 %v2234_v56  ;;  %v712_v15 = vld [vmem:[%s2127_s15 + $0x10] sm:$0xff]  ;;  %v713_v16 = vld [vmem:[%s2127_s15 + $0x18] sm:$0xff]  ;;  %v1323_v17 = vunpack.c.0.s8 %v1322_v63  ;;  %s1654_s16 = scalar_lea.vmem %s1653_s20, 2048 }
  0xf4   : > { %v2210_v47 = vstv %s1275_s24  ;;  %v2215_v49 = vstv %s1276_s17  ;;  %v2297_v34 = vmul.f32 %v711_v27, %v703_v24 }
  0xf5   : > { %v788_v48 = vsel %vm778_vm0, %v2210_v47, 0.0  ;;  %v789_v51 = vsel %vm779_vm1, %v2210_v47, 0.0  ;;  %v2225_v53 = vstv %s1277_s23  ;;  %v2240_v59 = vstv %s1278_s25 }
  0xf6   : > { %v806_v52 = vsel %vm796_vm2, %v2215_v49, %v788_v48  ;;  %v807_v55 = vsel %vm797_vm3, %v2215_v49, %v789_v51  ;;  %v784_v0 = vsel %vm774_vm6, %v2210_v47, 0.0  ;;  %v785_v12 = vsel %vm775_vm8, %v2210_v47, 0.0  ;;  %v716_v48 = vld [vmem:[%s2127_s15 + $0x30] sm:$0xff] }
  0xf7   : > { %v824_v58 = vsel %vm814_vm4, %v2225_v53, %v806_v52  ;;  %v825_v60 = vsel %vm815_vm5, %v2225_v53, %v807_v55  ;;  %v2256_v14 = vstv %s1279_s19  ;;  %v802_v18 = vsel %vm792_vm10, %v2215_v49, %v784_v0 }
  0xf8   : > { %v842_v11 = vsel %vm832_vm7, %v2240_v59, %v824_v58  ;;  %v843_v13 = vsel %vm833_vm9, %v2240_v59, %v825_v60  ;;  %vm869_vm0 = vcmp.eq.s32.totalorder %v2144_v8, 6  ;;  %v2265_v19 = vstv %s2230_s13 }
  0xf9   : > { %v803_v21 = vsel %vm793_vm11, %v2215_v49, %v785_v12  ;;  %vm811_vm1 = vcmp.eq.s32.totalorder %v2136_v4, 3  ;;  %v860_v22 = vsel %vm850_vm12, %v2256_v14, %v842_v11  ;;  %v861_v23 = vsel %vm851_vm13, %v2256_v14, %v843_v13 }
  0xfa   : > { %vm780_vm2 = vcmp.eq.s32.totalorder %v2150_v9, 1  ;;  %v820_v28 = vsel %vm810_vm15, %v2225_v53, %v802_v18  ;;  %vm828_vm3 = vcmp.eq.s32.totalorder %v2134_v3, 4  ;;  %v821_v30 = vsel %vm811_vm1, %v2225_v53, %v803_v21 }
  0xfb   : > { %vm829_vm4 = vcmp.eq.s32.totalorder %v2136_v4, 4  ;;  %vm781_vm5 = vcmp.eq.s32.totalorder %v2152_v10, 1  ;;  %v2288_v31 = vsel %vm868_vm14, %v2265_v19, %v860_v22  ;;  %v2293_v32 = vsel %vm869_vm0, %v2265_v19, %v861_v23 }
  0xfc   : > { %v790_v33 = vsel %vm780_vm2, %v2210_v47, 0.0  ;;  %vm798_vm6 = vcmp.eq.s32.totalorder %v2150_v9, 2  ;;  %v838_v35 = vsel %vm828_vm3, %v2240_v59, %v820_v28  ;;  %vm846_vm7 = vcmp.eq.s32.totalorder %v2134_v3, 5 }
  0xfd   : > { %vm776_vm8 = vcmp.eq.s32.totalorder %v2138_v5, 1  ;;  %v839_v7 = vsel %vm829_vm4, %v2240_v59, %v821_v30  ;;  %v791_v36 = vsel %vm781_vm5, %v2210_v47, 0.0  ;;  %vm799_vm9 = vcmp.eq.s32.totalorder %v2152_v10, 2 }
  0xfe   : > { %vm777_vm10 = vcmp.eq.s32.totalorder %v2140_v6, 1  ;;  %vm847_vm11 = vcmp.eq.s32.totalorder %v2136_v4, 5  ;;  %v1352_v8 = vunpack.c.3.s8 %v2219_v50  ;;  %v808_v37 = vsel %vm798_vm6, %v2215_v49, %v790_v33  ;;  %v717_v50 = vld [vmem:[%s2127_s15 + $0x38] sm:$0xff]  ;;  %s975_s15 = scalar_lea.sflag [#allocation4], %s2098_s29 }
  0xff   : > { %vm816_vm12 = vcmp.eq.s32.totalorder %v2150_v9, 3  ;;  %v856_v38 = vsel %vm846_vm7, %v2256_v14, %v838_v35  ;;  %vm864_vm13 = vcmp.eq.s32.totalorder %v2134_v3, 6  ;;  %v786_v39 = vsel %vm776_vm8, %v2210_v47, 0.0  ;;  %v1356_v3 = vld [vmem:[%s463_s22 + $0x4] sm:$0xff]   ;;  %s555_s22 = scalar_lea.vmem [#allocation13], %s2116_s30 }
 0x100   : > { %vm794_vm14 = vcmp.eq.s32.totalorder %v2138_v5, 2  ;;  %v809_v40 = vsel %vm799_vm9, %v2215_v49, %v791_v36  ;;  %vm817_vm15 = vcmp.eq.s32.totalorder %v2152_v10, 3  ;;  %v787_v41 = vsel %vm777_vm10, %v2210_v47, 0.0 }
 0x101   : > { %vm795_vm0 = vcmp.eq.s32.totalorder %v2140_v6, 2  ;;  %v857_v42 = vsel %vm847_vm11, %v2256_v14, %v839_v7  ;;  %vm865_vm1 = vcmp.eq.s32.totalorder %v2136_v4, 6  ;;  %v826_v43 = vsel %vm816_vm12, %v2225_v53, %v808_v37  ;;  %v625_v37 = vld [vmem:[%s2119_s1 + $0x18] sm:$0xff] }
 0x102   : > { %vm834_vm2 = vcmp.eq.s32.totalorder %v2150_v9, 4  ;;  %v709_v45 = vcvt.s32.f32 %v1352_v8  ;;  %v804_v46 = vsel %vm794_vm14, %v2215_v49, %v786_v39  ;;  %vm812_vm3 = vcmp.eq.s32.totalorder %v2138_v5, 3 }
 0x103   : > { %v827_v47 = vsel %vm817_vm15, %v2225_v53, %v809_v40  ;;  %vm835_vm4 = vcmp.eq.s32.totalorder %v2152_v10, 4  ;;  %v805_v51 = vsel %vm795_vm0, %v2215_v49, %v787_v41  ;;  %vm813_vm5 = vcmp.eq.s32.totalorder %v2140_v6, 3  ;;  %v622_v40 = vld [vmem:[%s2119_s1] sm:$0xff]  ;;  %v623_v41 = vld [vmem:[%s2119_s1 + $0x8] sm:$0xff] }
 0x104   : > { %v844_v52 = vsel %vm834_vm2, %v2240_v59, %v826_v43  ;;  %vm852_vm6 = vcmp.eq.s32.totalorder %v2150_v9, 5  ;;  %v1344_v55 = vunpack.c.3.s8 %v2234_v56  ;;  %v2337_v57 = vsel %vm864_vm13, %v2265_v19, %v856_v38 }
 0x105   : > { %v2342_v49 = vsel %vm865_vm1, %v2265_v19, %v857_v42  ;;  %v822_v58 = vsel %vm812_vm3, %v2225_v53, %v804_v46  ;;  %vm830_vm7 = vcmp.eq.s32.totalorder %v2138_v5, 4  ;;  %v2346_v60 = vmul.f32 %v716_v48, %v708_v44  ;;  %v628_v46 = vld [vmem:[%s2119_s1 + $0x30] sm:$0xff]  ;;  %v629_v48 = vld [vmem:[%s2119_s1 + $0x38] sm:$0xff] }
 0x106   : > { %v2348_v61 = vmul.f32 %v717_v50, %v709_v45  ;;  %v823_v56 = vsel %vm813_vm5, %v2225_v53, %v805_v51  ;;  %vm831_vm8 = vcmp.eq.s32.totalorder %v2140_v6, 4  ;;  %v845_v4 = vsel %vm835_vm4, %v2240_v59, %v827_v47 }
 0x107   : > { %vm853_vm9 = vcmp.eq.s32.totalorder %v2152_v10, 5  ;;  %v862_v62 = vsel %vm852_vm6, %v2256_v14, %v844_v52  ;;  %vm870_vm10 = vcmp.eq.s32.totalorder %v2150_v9, 6  ;;  %v704_v0 = vcvt.s32.f32 %v1343_v54 }
 0x108   : > { %v705_v53 = vcvt.s32.f32 %v1344_v55  ;;  %v840_v1 = vsel %vm830_vm7, %v2240_v59, %v822_v58  ;;  %vm848_vm11 = vcmp.eq.s32.totalorder %v2138_v5, 5  ;;  %v841_v2 = vsel %vm831_vm8, %v2240_v59, %v823_v56 }
 0x109   : > { %vm849_vm12 = vcmp.eq.s32.totalorder %v2140_v6, 5  ;;  %v1327_v11 = vunpack.c.0.s8 %v1356_v3  ;;  %v1328_v12 = vunpack.c.1.s8 %v1356_v3  ;;  %v863_v13 = vsel %vm853_vm9, %v2256_v14, %v845_v4 }
 0x10a   : > { %vm871_vm13 = vcmp.eq.s32.totalorder %v2152_v10, 6  ;;  %v1324_v18 = vunpack.c.1.s8 %v1322_v63  ;;  %v858_v20 = vsel %vm848_vm11, %v2256_v14, %v840_v1  ;;  %vm866_vm14 = vcmp.eq.s32.totalorder %v2138_v5, 6 }
 0x10b   : > { %v1335_v21 = vunpack.c.2.s8 %v1322_v63  ;;  %v1336_v59 = vunpack.c.3.s8 %v1322_v63  ;;  %v859_v24 = vsel %vm849_vm12, %v2256_v14, %v841_v2  ;;  %vm867_vm15 = vcmp.eq.s32.totalorder %v2140_v6, 6  ;;  %v624_v14 = vld [vmem:[%s2119_s1 + $0x10] sm:$0xff]  ;;  %v626_v6 = vld [vmem:[%s2119_s1 + $0x20] sm:$0xff] }
 0x10c   : > { %v1331_v27 = vunpack.c.2.s8 %v1356_v3  ;;  %v1332_v28 = vunpack.c.3.s8 %v1356_v3  ;;  %v720_v30 = vmul.f32 %v712_v15, %v704_v0  ;;  %v721_v33 = vmul.f32 %v713_v16, %v705_v53 }
 0x10d   : > { %v616_v35 = vcvt.s32.f32 %v1327_v11  ;;  %v617_v7 = vcvt.s32.f32 %v1328_v12  ;;  %v2377_v36 = vsel %vm870_vm10, %v2265_v19, %v862_v62  ;;  %v2382_v8 = vsel %vm871_vm13, %v2265_v19, %v863_v13 }
 0x10e   : > { %v614_v38 = vcvt.s32.f32 %v1323_v17  ;;  %v615_v39 = vcvt.s32.f32 %v1324_v18  ;;  %vm882_vm0 = vcmp.eq.f32.partialorder %v2337_v57, 0.0  ;;  %vm883_vm1 = vcmp.eq.f32.partialorder %v2342_v49, 0.0 }
 0x10f   : > { %v876_v9 = vsel %vm866_vm14, %v2265_v19, %v858_v20  ;;  %v877_v10 = vsel %vm867_vm15, %v2265_v19, %v859_v24  ;;  %v620_v42 = vcvt.s32.f32 %v1335_v21  ;;  %v621_v43 = vcvt.s32.f32 %v1336_v59  ;;  %v627_v19 = vld [vmem:[%s2119_s1 + $0x28] sm:$0xff]  ;;  %s994_s1 = sshll.u32 %s555_s22, 4  ;;  %s2429_s1 = int_to_ptr.vmem [resolvable:$true] %s994_s1 }
 0x110   : > { %vm884_vm2 = vcmp.eq.f32.partialorder %v876_v9, 0.0  ;;  %vm885_vm3 = vcmp.eq.f32.partialorder %v877_v10, 0.0  ;;  %v618_v50 = vcvt.s32.f32 %v1331_v27  ;;  %v619_v47 = vcvt.s32.f32 %v1332_v28  ;;  %s1648_s7 = scalar_lea.vmem %s2429_s1, 1024  ;;  %p1655_p13 = scmp.lt.s32.totalorder %s2429_s1, %s1653_s20 }
 0x111   : > { %v632_v52 = vmul.f32 %v624_v14, %v616_v35  ;;  %v633_v54 = vmul.f32 %v625_v37, %v617_v7  ;;  %vm888_vm4 = vcmp.eq.f32.partialorder %v2377_v36, 0.0  ;;  %vm889_vm5 = vcmp.eq.f32.partialorder %v2382_v8, 0.0  ;;  %p1649_p9 = scmp.ne.s32.totalorder %s2429_s1, %s1648_s7  ;;  %p1656_p10 = scmp.lt.s32.totalorder %s1654_s16, %s1648_s7 }
 0x112   : > { %v630_v56 = vmul.f32 %v622_v40, %v614_v38  ;;  %v631_v3 = vmul.f32 %v623_v41, %v615_v39  ;;  %v636_v63 = vmul.f32 %v628_v46, %v620_v42  ;;  %v637_v0 = vmul.f32 %v629_v48, %v621_v43 }
 0x113   : > { %v635_v11 = vmul.f32 %v627_v19, %v619_v47  ;;  %vm886_vm6 = vcmp.eq.f32.partialorder %v2288_v31, 0.0  ;;  %vm887_vm7 = vcmp.eq.f32.partialorder %v2293_v32, 0.0  ;;  %p1650_p3 = pnand %p1649_p9, %p2529_p5  ;;  %p1657_p8 = por %p1656_p10, %p1655_p13 }
 0x115   : > { %p1651_p12 = pneg %p1650_p3 }
 0x117   : > { %p1658_p0 = pnand %p1657_p8, %p1651_p12 }
 0x151   : > { %v760_v22 = vpop.permute.xlu1 %759  ;;  %v752_v23 = vpop.permute.xlu0 %751 }
 0x152   : > { %v766_v55 = vmul.f32 %v752_v23, %v2280_v29  ;;  %v767_v58 = vmul.f32 %v752_v23, %v2297_v34  ;;  %v770_v4 = vmul.f32 %v760_v22, %v2273_v25  ;;  %v771_v62 = vmul.f32 %v760_v22, %v2275_v26 }
 0x153   : > { %v634_v29 = vmul.f32 %v626_v6, %v618_v50 }
 0x154   : > { %v890_v17 = vmul.f32 %v2337_v57, %v766_v55  ;;  %v891_v25 = vmul.f32 %v2342_v49, %v767_v58 }
 0x155   : > { %v764_v44 = vpop.permute.xlu1 %763  ;;  %v756_v45 = vpop.permute.xlu0 %755 }
 0x156   : > { %v768_v5 = vmul.f32 %v756_v45, %v720_v30  ;;  %v769_v51 = vmul.f32 %v756_v45, %v721_v33  ;;  %v772_v53 = vmul.f32 %v764_v44, %v2346_v60  ;;  %v773_v1 = vmul.f32 %v764_v44, %v2348_v61 }
 0x157   : > { %v894_v60 = vmul.f32 %v2288_v31, %v770_v4  ;;  %v895_v61 = vmul.f32 %v2293_v32, %v771_v62 }
 0x158   : > { %v892_v34 = vmul.f32 %v876_v9, %v768_v5  ;;  %v893_v12 = vmul.f32 %v877_v10, %v769_v51  ;;  %v896_v59 = vmul.f32 %v2377_v36, %v772_v53  ;;  %v897_v22 = vmul.f32 %v2382_v8, %v773_v1 }
 0x159   : > { %v668_v2 = vpop.permute.xlu1 %667  ;;  %v664_v16 = vpop.permute.xlu0 %663 }
 0x15a   : > { %v680_v13 = vmul.f32 %v668_v2, %v632_v52  ;;  %v681_v15 = vmul.f32 %v668_v2, %v633_v54  ;;  %v678_v18 = vmul.f32 %v664_v16, %v630_v56  ;;  %v679_v26 = vmul.f32 %v664_v16, %v631_v3 }
 0x15c   : > { %v900_v20 = vmul.f32 %v892_v34, %v680_v13  ;;  %v901_v21 = vmul.f32 %v893_v12, %v681_v15  ;;  %v898_v23 = vmul.f32 %v890_v17, %v678_v18  ;;  %v899_v24 = vmul.f32 %v891_v25, %v679_v26 }
 0x15d   : > { %v676_v27 = vpop.permute.xlu1 %675  ;;  %v672_v7 = vpop.permute.xlu0 %671 }
 0x15e   : > { %v908_v28 = vsel %vm884_vm2, %v680_v13, %v900_v20  ;;  %v909_v30 = vsel %vm885_vm3, %v681_v15, %v901_v21  ;;  %v684_v33 = vmul.f32 %v676_v27, %v636_v63  ;;  %v685_v35 = vmul.f32 %v676_v27, %v637_v0 }
 0x15f   : > { %916 = vst [vmem:[%s555_s22 + $0x10] sm:$0xff] %v908_v28  ;;  %917 = vst [vmem:[%s555_s22 + $0x18] sm:$0xff] %v909_v30  ;;  %v906_v14 = vsel %vm882_vm0, %v678_v18, %v898_v23  ;;  %v907_v37 = vsel %vm883_vm1, %v679_v26, %v899_v24  ;;  %v682_v38 = vmul.f32 %v672_v7, %v634_v29 }
 0x160   : > { %v683_v39 = vmul.f32 %v672_v7, %v635_v11  ;;  %914 = vst [vmem:[%s555_s22] sm:$0xff] %v906_v14  ;;  %915 = vst [vmem:[%s555_s22 + $0x8] sm:$0xff] %v907_v37  ;;  %v904_v9 = vmul.f32 %v896_v59, %v684_v33  ;;  %v905_v10 = vmul.f32 %v897_v22, %v685_v35 }
 0x161   : > { %v902_v40 = vmul.f32 %v894_v60, %v682_v38 }
 0x162   : > { %v903_v41 = vmul.f32 %v895_v61, %v683_v39  ;;  %v912_v31 = vsel %vm888_vm4, %v684_v33, %v904_v9  ;;  %v913_v32 = vsel %vm889_vm5, %v685_v35, %v905_v10 }
 0x163   : > { %920 = vst [vmem:[%s555_s22 + $0x30] sm:$0xff] %v912_v31  ;;  %921 = vst [vmem:[%s555_s22 + $0x38] sm:$0xff] %v913_v32  ;;  %v910_v57 = vsel %vm886_vm6, %v682_v38, %v902_v40 }
 0x164   : > { %v911_v49 = vsel %vm887_vm7, %v683_v39, %v903_v41  ;;  %918 = vst [vmem:[%s555_s22 + $0x20] sm:$0xff] %v910_v57 }
 0x165   : > { %919 = vst [vmem:[%s555_s22 + $0x28] sm:$0xff] %v911_v49 }
 0x166   : > { %1661 = shalt.err (!%p1658_p0)
}
 0x167   : > { %s1662_s28 = scalar_lea.hbm %s2427_s27, 1024  ;;  %s1666_s24 = scalar_lea.hbm %s2485_s8, 2048 }
 0x168   : > { %p1663_p6 = scmp.ne.s32.totalorder %s2427_s27, %s1662_s28  ;;  %p1667_p4 = scmp.lt.u32.totalorder %s2427_s27, %s2485_s8 }
 0x169   : > { %p1668_p11 = scmp.lt.u32.totalorder %s1666_s24, %s1662_s28  ;;  %p1670_p9 = scmp.lt.u32.totalorder %s1662_s28, %s2427_s27 }
 0x16a   : > { %p1664_p7 = pnand %p1663_p6, %p2529_p5 }
 0x16b   : > { %p1669_p2 = por %p1668_p11, %p1667_p4 }
 0x16c   : > { %p1665_p1 = pneg %p1664_p7 }
 0x16d   : > { %p1671_p3 = por %p1670_p9, %p1669_p2 }
 0x16f   : > { %p1672_p12 = pnand %p1671_p3, %p1665_p1 }
 0x171   : > { %1675 = shalt.err (!%p1672_p12)
}
 0x172   : > { %s1747_s25 = smov 128   ;;  %s1748_s19 = smov 8  }
 0x173   : > { %1376 = dma.vmem_to_hbm [thread:$0]  (%p2529_p5), %s2429_s1, 1024, %s2427_s27, %s975_s15, %s1747_s25, %s1747_s25, %s1748_s19  }
 0x174 PF: > { %s2530_s13 = sld [smem:[#allocation22_spill]]  ;;  %s2531_s11 = sld [smem:[#allocation26_spill]] }
 0x175   : > { %p2533_p10 = scmp.ge.s32.totalorder %s1730_s12, 2 }
 0x17a   : > { %s1026_s22 = sand.u32 1, %s2530_s13   ;;  %p2532_p13 = scmp.ne.s32.totalorder %s2531_s11, 0 }
 0x17b   : > { %s1027_s26 = scalar_lea.sflag [#allocation4], %s1026_s22 }
 0x17c   : > { %p1401_p8 = pnand %p2533_p10, %p2532_p13 }
 0x17e   : > { %1709 = dma.done.wait (!%p1401_p8), %s1027_s26, 1024  }
 0x17f   : > { %1711 = vsyncadd (!%p1401_p8), %s1027_s26, 4294966272  ;;  %s1036_s30 = scalar_lea.sflag [#allocation15], %s1026_s22 }
 0x180   : > { %1713 = dma.done.wait (!%p1401_p8), %s1036_s30, 256  }
 0x181   : > { %1715 = vsyncadd (!%p1401_p8), %s1036_s30, 4294967040  ;;  %s2534_s12 = sld [smem:[#allocation24_spill]]  ;;  %s2535_s7 = sld [smem:[#allocation23_spill]] }
 0x182   : > { %s2536_s11 = sld [smem:[#allocation25_spill]]  ;;  %s2537_s30 = smov %s1722_s10 }
 0x187   : > { %p33_p5 = scmp.ge.s32.totalorder %s2534_s12, 4   ;;  %s2538_s10 = smov %s2535_s7 }
 0x189   :  { %35 = sbr.rel (!%p33_p5) target bundleno = 16 (0x10), region = 173 }
 0x190   :  { %1041 = vsyncpa [#allocation3], 1 }
 0x191   :  { %1043 = vsyncpa [#allocation3 + $0x1], 1 }
 0x192   :  { %1044 = vsyncpa [#allocation7], 1 }
 0x193   :  { %1046 = vsyncpa [#allocation7 + $0x1], 1 }
 0x194   :  { %1047 = vsyncpa [#allocation10], 1 }
 0x195   :  { %1049 = vsyncpa [#allocation10 + $0x1], 1 }
 0x196   :  { %1050 = vsyncpa [#allocation4], 1 }
 0x197   :  { %1052 = vsyncpa [#allocation4 + $0x1], 1 }
 0x198   :  { %1053 = vsyncpa [#allocation15], 1 }
 0x199   :  { %1055 = vsyncpa [#allocation15 + $0x1], 1 }
 0x19a   :  { %1056 = vsyncpa [#allocation5], 1 }
 0x19b   :  { %1058 = vsyncpa [#allocation5 + $0x1], 1 }

</bundles_post_ra>
